<compile_context>
chip_gen: v7x
topology: tpu7x:2x2x1
jax: 0.10.0
libtpu: 0.0.40
codegen_flags: <defaults>
</compile_context>

<pallas_src>
import jax
import jax.numpy as jnp
import numpy as np
from jax.experimental import pallas as pl
from jax.experimental.pallas import tpu as pltpu


def _scale_thirds_kernel(axis_ref, x_ref, o_ref):
    # axis_ref : (3,) f32 in SMEM -- per-third scale
    # x_ref    : (1, T, L) VMEM block of third pl.program_id(1), tile pl.program_id(0)
    # o_ref    : matching output block
    scale = axis_ref[pl.program_id(1)]
    o_ref[...] = (x_ref[...].astype(jnp.float32) * scale).astype(o_ref.dtype)


def _scale_thirds(x, axis_scales_f32, *, max_tile_sublanes=2048, donate=False):
    """Scale each contiguous row-third of x (shape (3*M, num_modes)) by its scalar."""
    rows, num_modes = x.shape
    assert rows % 3 == 0, "leading dim must be 3*M"
    m = rows // 3
    w = m * num_modes
    itemsize = jnp.dtype(x.dtype).itemsize
    cost = pl.CostEstimate(flops=rows * num_modes,
                           transcendentals=0,
                           bytes_accessed=2 * rows * num_modes * itemsize)

    if w % 128 == 0:
        # Lane-dense + full sublane packing: each third -> (w//128, 128) rows of
        # exactly one vreg lane-width.  Free row-major reshape (thirds are
        # contiguous in the original (3*M, num_modes) layout).
        r = w // 128
        view_shape = (3, r, 128)
    else:
        # Fallback layout (W not a multiple of 128): keep (3, M, num_modes).
        # TODO(synk): lane utilisation is num_modes/128 here; pad num_modes to a
        # multiple of 128 in the caller if this path ever matters for perf.
        r = m
        view_shape = (3, m, num_modes)

    # Tile the packed-row axis; max_tile_sublanes is a multiple of 8 so the
    # block_shape satisfies the (8,128) rule, and <=2048 rows x 128 lanes x 4 B
    # = 1 MiB per block (double-buffered in+out = 4 MiB VMEM, safe on all chips).
    tile = r if r <= max_tile_sublanes else max_tile_sublanes

    x_view = x.reshape(view_shape)
    block = (1, tile, view_shape[2])
    # grid = (tiles, thirds): large axis outermost for even megacore sharding.
    spec = pl.BlockSpec(block, lambda i, t: (t, i, 0))

    out_view = pl.pallas_call(
        _scale_thirds_kernel,
        out_shape=jax.ShapeDtypeStruct(view_shape, x.dtype),
        grid=(pl.cdiv(r, tile), 3),
        in_specs=[
            pl.BlockSpec(memory_space=pltpu.SMEM),   # (3,) f32 scales
            spec,                                    # data blocks
        ],
        out_specs=spec,
        compiler_params=pltpu.CompilerParams(
            dimension_semantics=("parallel", "parallel")),
        cost_estimate=cost,
        input_output_aliases=({1: 0} if donate else {}),
    )(axis_scales_f32, x_view)

    return out_view.reshape(rows, num_modes)


def axis_parameters_decoder_forward(phi, phi3, axis_parameters, *, donate=False):
    """JAX/Pallas equivalent of axis_parameters_Decoder.forward.

    Returns (PHI_scaled, PHI3_scaled), matching the PyTorch return order.
    Set donate=True to alias inputs to outputs (in-place, like PyTorch).
    """
    axis_f32 = axis_parameters.reshape(3).astype(jnp.float32)
    phi_out = _scale_thirds(phi, axis_f32, donate=donate)
    phi3_out = _scale_thirds(phi3, axis_f32, donate=donate)
    return phi_out, phi3_out


def _numpy_reference(phi_np, phi3_np, axis_np, num_modes):
    """Direct transcription of the PyTorch/numpy forward for verification."""
    phi3 = np.reshape(np.array(phi3_np), (phi3_np.shape[0] // 3, 3, num_modes),
                      order="F")
    phi3[:, 0, :] *= axis_np[0][0]
    phi3[:, 1, :] *= axis_np[0][1]
    phi3[:, 2, :] *= axis_np[0][2]
    phi3 = np.reshape(phi3, (-1, num_modes), order="F")

    phi = np.reshape(np.array(phi_np), (phi_np.shape[0] // 3, 3, num_modes),
                     order="F")
    phi[:, 0, :] *= axis_np[0][0]
    phi[:, 1, :] *= axis_np[0][1]
    phi[:, 2, :] *= axis_np[0][2]
    phi = np.reshape(phi, (-1, num_modes), order="F")
    return phi, phi3


if __name__ == "__main__":
    key = jax.random.PRNGKey(0)
    k1, k2, k3, k4, k5 = jax.random.split(key, 5)

    # --- Main case (packed lane-dense path: W = M*num_modes % 128 == 0) ---
    num_modes = 8
    m_phi = 32    # PHI  : 96 rows,  W = 256 -> packed view (3, 2, 128)
    m_phi3 = 16   # PHI3 : 48 rows,  W = 128 -> packed view (3, 1, 128)

    phi = jax.random.normal(k1, (3 * m_phi, num_modes), dtype=jnp.float32)
    phi3 = jax.random.normal(k2, (3 * m_phi3, num_modes), dtype=jnp.float32)
    axis_parameters = jax.random.normal(k3, (1, 3), dtype=jnp.float32)

    # Snapshot unscaled inputs for the reference (kernel is out-of-place here).
    phi_np = np.asarray(phi)
    phi3_np = np.asarray(phi3)
    axis_np = np.asarray(axis_parameters)

    phi_out, phi3_out = axis_parameters_decoder_forward(phi, phi3,
                                                        axis_parameters)
    jax.block_until_ready((phi_out, phi3_out))

    ref_phi, ref_phi3 = _numpy_reference(phi_np, phi3_np, axis_np, num_modes)
    np.testing.assert_allclose(np.asarray(phi_out), ref_phi,
                               rtol=1e-6, atol=1e-6)
    np.testing.assert_allclose(np.asarray(phi3_out), ref_phi3,
                               rtol=1e-6, atol=1e-6)

    # --- Fallback path (W not a multiple of 128) ---
    num_modes_b = 10
    m_b = 12
    phi_b = jax.random.normal(k4, (3 * m_b, num_modes_b), dtype=jnp.float32)
    axis_b = jax.random.normal(k5, (1, 3), dtype=jnp.float32)
    out_b = _scale_thirds(phi_b, axis_b.reshape(3).astype(jnp.float32))
    jax.block_until_ready(out_b)
    ref_b, _ = _numpy_reference(np.asarray(phi_b), np.asarray(phi_b),
                                np.asarray(axis_b), num_modes_b)
    np.testing.assert_allclose(np.asarray(out_b), ref_b, rtol=1e-6, atol=1e-6)

    print("KERNEL_OK")
</pallas_src>

<mosaic_0001>
module attributes {stable_mosaic.version = 11 : i64} {
  func.func @_scale_thirds_kernel(%arg0: i32, %arg1: i32, %arg2: memref<3xf32, #tpu.memory_space<smem>>, %arg3: memref<1x2x128xf32, #tpu.memory_space<vmem>>, %arg4: memref<1x2x128xf32, #tpu.memory_space<vmem>>) attributes {dimension_semantics = [#tpu.dimension_semantics<parallel>, #tpu.dimension_semantics<parallel>], iteration_bounds = array<i64: 1, 3>, scalar_prefetch = 0 : i64, scratch_operands = 0 : i64, tpu.core_type = #tpu.core_type<tc>, window_params = [{transform_indices = @transform_0, window_bounds = array<i64: 3>}, {transform_indices = @transform_1, window_bounds = array<i64: 1, 2, 128>}, {transform_indices = @transform_2, window_bounds = array<i64: 1, 2, 128>}]} {
    %0 = arith.index_cast %arg1 : i32 to index
    %1 = memref.load %arg2[%0] : memref<3xf32, #tpu.memory_space<smem>>
    %c0 = arith.constant 0 : index
    %c0_0 = arith.constant 0 : index
    %c0_1 = arith.constant 0 : index
    %2 = vector.load %arg3[%c0, %c0_0, %c0_1] : memref<1x2x128xf32, #tpu.memory_space<vmem>>, vector<1x2x128xf32>
    %3 = vector.broadcast %1 : f32 to vector<1x2x128xf32>
    %4 = arith.mulf %2, %3 : vector<1x2x128xf32>
    %c0_2 = arith.constant 0 : index
    %c0_3 = arith.constant 0 : index
    %c0_4 = arith.constant 0 : index
    %5 = vector.load %arg4[%c0_2, %c0_3, %c0_4] : memref<1x2x128xf32, #tpu.memory_space<vmem>>, vector<1x2x128xf32>
    tpu.vector_store %arg4[%c0_2, %c0_3, %c0_4], %4 {strides = array<i32>} : memref<1x2x128xf32, #tpu.memory_space<vmem>>, vector<1x2x128xf32>,
    return
  }
  func.func @transform_0(%arg0: i32, %arg1: i32) -> i32 {
    %c0_i32 = arith.constant 0 : i32
    %c0_i32_0 = arith.constant 0 : i32
    return %c0_i32 : i32
  }
  func.func @transform_1(%arg0: i32, %arg1: i32) -> (i32, i32, i32) {
    %c0_i32 = arith.constant 0 : i32
    %c0_i32_0 = arith.constant 0 : i32
    return %arg1, %arg0, %c0_i32 : i32, i32, i32
  }
  func.func @transform_2(%arg0: i32, %arg1: i32) -> (i32, i32, i32) {
    %c0_i32 = arith.constant 0 : i32
    %c0_i32_0 = arith.constant 0 : i32
    return %arg1, %arg0, %c0_i32 : i32, i32, i32
  }
}

</mosaic_0001>

<bundles_post_ra>
// kernel: tpu_custom_call.1
= control target key start
LH: loop header
LB: loop body
LE: loop exit
PB: predicated region body
PF: predicated region fallthrough
CT: control target
= control target key end

     0   :  { %7 = vsyncpa [#allocation5], 0  ;;  %s762_s0 = inlined_call_operand.hbm [shape: f32[3], index: 0, kind: input, shape index: {}]   ;;  %s763_s1 = inlined_call_operand.hbm [shape: f32[3,2,128], index: 1, kind: input, shape index: {}]   ;;  %s764_s2 = inlined_call_operand.hbm [shape: f32[3,2,128], index: 2, kind: output, shape index: {}]  }
   0x1   :  { %8 = vsyncpa [#allocation3], 0 }
   0x2   :  { %10 = vsyncpa [#allocation3 + $0x1], 0 }
   0x3   :  { %11 = vsyncpa [#allocation4], 0 }
   0x4   :  { %13 = vsyncpa [#allocation4 + $0x1], 0  ;;  %s537_s9 = smov 0   ;;  %s539_s10 = smov 0  }
   0x5   :  { %s541_s11 = smov 0   ;;  %s543_s12 = smov 0  }
   0x6   :  { %s545_s13 = smov 0   ;;  %s547_s14 = smov 0  }
   0x7 LB: > { %s300_s15 = sadd.s32 4294967295, %s517_s14   ;;  %s301_s16 = sadd.s32 4294967294, %s517_s14   ;;  %s517_s14 = sphi %s547_s14, %s19_s14   ;;  %s513_s13 = sphi %s545_s13, %s787_s13   ;;  %s509_s12 = sphi %s543_s12, %s786_s12   ;;  %s505_s11 = sphi %s541_s11, %s785_s11   ;;  %s501_s10 = sphi %s539_s10, %s784_s10   ;;  %s497_s9 = sphi %s537_s9, %s783_s9  }
   0x8   : > { %p74_p0 = scmp.ne.s32.totalorder %s501_s10, %s497_s9  ;;  %p571_p1 = scmp.eq.s32.totalorder %s300_s15, 0 }
   0x9   : > { %p575_p2 = scmp.eq.s32.totalorder %s300_s15, 2  ;;  %p106_p3 = scmp.eq.s32.totalorder %s301_s16, 2 }
   0xa   : > { %s769_s17 = scalar_select %p571_p1, 1, 0 }
   0xb   : > { %p581_p4 = por %p571_p1, %p74_p0  ;;  %p302_p5 = scmp.ge.s32.totalorder %s517_s14, 1 }
   0xc   : > { %p586_p6 = por %p106_p3, %p74_p0  ;;  %p113_p7 = scmp.lt.s32.totalorder %s517_s14, 4 }
   0xd   : > { %s771_s19 = scalar_select %p581_p4, 1, 0 }
   0xe   : > { %s772_s20 = scalar_select %p586_p6, 1, 0 }
   0xf   : > { %p591_p8 = pnand %p302_p5, %p113_p7  ;;  %s28_s22 = sadd.s32 1, %s513_s13 }
  0x10   : > { %p604_p11 = scmp.ge.s32.totalorder %s28_s22, 3  ;;  %s61_s25 = sadd.s32 1, %s505_s11 }
  0x11   : > { %p323_p9 = pneg %p591_p8  ;;  %p68_p12 = scmp.ne.s32.totalorder %s505_s11, %s501_s10 }
  0x12   : > { %p69_p13 = scmp.eq.s32.totalorder %s517_s14, 0  ;;  %s388_s28 = scalar_lea.hbm %s762_s0, 16 }
  0x13   : > { %p600_p10 = pnand %p323_p9, %p571_p1  ;;  %p389_p0 = scmp.ne.s32.totalorder %s762_s0, %s388_s28 }
  0x14   : > { %p395_p9 = scmp.lt.u32.totalorder %s388_s28, %s762_s0 }
  0x15   : > { %p390_p3 = pneg %p600_p10 }
  0x17   : > { %p391_p5 = pnand %p390_p3, %p389_p0 }
  0x19   : > { %p392_p7 = pneg %p391_p5 }
  0x1b   : > { %p397_p6 = pnand %p395_p9, %p392_p7 }
  0x1d   : > { %400 = shalt.err (!%p397_p6)
}
  0x1e   : > { %s519_s5 = smov [#allocation2]   ;;  %s789_s22 = smov (%p604_p11, %s28_s22), 0 }
  0x1f   : > { %326 = dma.hbm_to_smem (!%p600_p10), %s762_s0, 16, %s519_s5, [#allocation5]  }
  0x20   : > { %p635_p6 = por %p69_p13, %p68_p12  ;;  %p644_p0 = por %p575_p2, %p68_p12 }
  0x21   : > { %s56_s16 = ssub.s32 %s513_s13, %s789_s22  ;;  %p336_p3 = scmp.lt.s32.totalorder %s517_s14, 3 }
  0x22   : > { %s777_s15 = scalar_select %p644_p0, 1, 0 }
  0x23   : > { %p59_p5 = scmp.eq.s32.totalorder %s56_s16, 0  ;;  %s135_s23 = sand.u32 1, %s505_s11  }
  0x24   : > { %s305_s24 = sshll.u32 %s135_s23, 1  ;;  %s306_s27 = sshll.u32 %s513_s13, 5 }
  0x25   : > { %s653_s26 = scalar_select %p59_p5, %s505_s11, %s61_s25  }
  0x26   : > { %s659_s30 = scalar_lea.hbm %s763_s1, %s306_s27  ;;  %s139_s18 = scalar_lea.vmem [#allocation6], %s305_s24 }
  0x27   : > { %s147_s3 = sshll.u32 %s139_s18, 4  ;;  %p665_p2 = pnand %p336_p3, %p635_p6  ;;  %s661_s3 = int_to_ptr.vmem [resolvable:$true] %s147_s3 }
  0x28   : > { %s136_s25 = scalar_lea.sflag [#allocation3], %s135_s23  ;;  %s401_s5 = scalar_lea.hbm %s659_s30, 32 }
  0x29   : > { %p402_p10 = scmp.ne.s32.totalorder %s659_s30, %s401_s5  ;;  %p403_p11 = pneg %p665_p2 }
  0x2a   : > { %s406_s16 = scalar_lea.hbm %s763_s1, 96  ;;  %p407_p7 = scmp.lt.u32.totalorder %s659_s30, %s763_s1 }
  0x2b   : > { %p404_p12 = pnand %p403_p11, %p402_p10  ;;  %p408_p9 = scmp.lt.u32.totalorder %s406_s16, %s401_s5 }
  0x2c   : > { %p410_p3 = scmp.lt.u32.totalorder %s401_s5, %s659_s30 }
  0x2d   : > { %p405_p13 = pneg %p404_p12  ;;  %p409_p6 = por %p408_p9, %p407_p7 }
  0x2f   : > { %p411_p5 = por %p410_p3, %p409_p6 }
  0x31   : > { %p412_p0 = pnand %p411_p5, %p405_p13 }
  0x33   : > { %415 = shalt.err (!%p412_p0)
}
  0x34   : > { %s416_s23 = scalar_lea.vmem %s661_s3, 32  ;;  %s520_s27 = smov [#allocation6]  }
  0x35   : > { %p417_p10 = scmp.ne.s32.totalorder %s661_s3, %s416_s23  ;;  %s421_s28 = sshll.u32 %s520_s27, 4  ;;  %s422_s28 = int_to_ptr.vmem [resolvable:$false] %s421_s28 }
  0x36   : > { %s423_s29 = scalar_lea.vmem %s422_s28, 64  ;;  %p424_p1 = scmp.lt.s32.totalorder %s661_s3, %s422_s28 }
  0x37   : > { %p419_p12 = pnand %p417_p10, %p403_p11  ;;  %p425_p7 = scmp.lt.s32.totalorder %s423_s29, %s416_s23 }
  0x39   : > { %p420_p4 = pneg %p419_p12  ;;  %p426_p9 = por %p425_p7, %p424_p1 }
  0x3b   : > { %p427_p6 = pnand %p426_p9, %p420_p4 }
  0x3d   : > { %430 = shalt.err (!%p427_p6)
}
  0x3e   : > { %330 = dma.hbm_to_vmem [thread:$0]  (!%p665_p2), %s659_s30, 32, %s661_s3, %s136_s25  }
  0x3f   : > { %156 = sbr.rel (%p591_p8) target bundleno = 103 (0x67), region = 28  ;;  %p779_p0 = scmp.ne.s32.totalorder (!%p591_p8), %s769_s17, 0 }
  0x46   : > { %484 = dma.done.wait (%p779_p0), [#allocation5], 16  }
  0x47   : > { %486 = vsyncadd (%p779_p0), [#allocation5], 4294967280  ;;  %s701_s18 = sand.u32 1, %s501_s10   ;;  %p780_p1 = scmp.ne.s32.totalorder %s771_s19, 0 }
  0x48   : > { %s309_s5 = sshll.u32 %s701_s18, 1  ;;  %s163_s4 = scalar_lea.sflag [#allocation3], %s701_s18 }
  0x49   : > { %s166_s6 = scalar_lea.vmem [#allocation6], %s309_s5 }
  0x4a   : > { %488 = dma.done.wait (%p780_p1), %s163_s4, 32  }
  0x4b   : > { %490 = vsyncadd (%p780_p1), %s163_s4, 4294967264 }
  0x4c   : > { %171 = sfence }
  0x4d   : > { %s188_s17 = sld [smem:[#allocation2 + %s509_s12]]  ;;  %v189_v0 = vld [vmem:[%s166_s6] sm:$0x3]  ;;  %s187_s21 = scalar_lea.vmem [#allocation7], %s309_s5 }
  0x4e   : > { %s208_s30 = sshll.u32 %s187_s21, 4  ;;  %s312_s3 = sshll.u32 %s509_s12, 5  ;;  %s711_s30 = int_to_ptr.vmem [resolvable:$true] %s208_s30 }
  0x4f   : > { %s716_s19 = scalar_lea.hbm %s764_s2, %s312_s3  ;;  %s194_s16 = scalar_lea.sflag [#allocation4], %s701_s18 }
  0x50   : > { %s431_s8 = scalar_lea.vmem %s711_s30, 32  ;;  %p781_p8 = scmp.ne.s32.totalorder %s777_s15, 0 }
  0x51   : > { %p432_p4 = scmp.ne.s32.totalorder %s711_s30, %s431_s8  ;;  %s521_s12 = smov [#allocation7]  }
  0x52   : > { %s435_s24 = sshll.u32 %s521_s12, 4  ;;  %s436_s24 = int_to_ptr.vmem [resolvable:$false] %s435_s24 }
  0x53   : > { %v190_v1 = vstv %s188_s17  ;;  %p433_p2 = pnand %p432_p4, %p781_p8  ;;  %s437_s23 = scalar_lea.vmem %s436_s24, 64 }
  0x54   : > { %v191_v2 = vmul.f32 %v190_v1, %v189_v0  ;;  %p438_p13 = scmp.lt.s32.totalorder %s711_s30, %s436_s24  ;;  %p439_p3 = scmp.lt.s32.totalorder %s437_s23, %s431_s8 }
  0x55   : > { %p434_p11 = pneg %p433_p2 }
  0x56   : > { %192 = vst [vmem:[%s187_s21] sm:$0x3] %v191_v2  ;;  %p440_p5 = por %p439_p3, %p438_p13 }
  0x58   : > { %p441_p10 = pnand %p440_p5, %p434_p11 }
  0x5a   : > { %444 = shalt.err (!%p441_p10)
}
  0x5b   : > { %s445_s27 = scalar_lea.hbm %s716_s19, 32  ;;  %s449_s18 = scalar_lea.hbm %s764_s2, 96 }
  0x5c   : > { %p446_p12 = scmp.ne.s32.totalorder %s716_s19, %s445_s27  ;;  %p450_p6 = scmp.lt.u32.totalorder %s716_s19, %s764_s2 }
  0x5d   : > { %p451_p0 = scmp.lt.u32.totalorder %s449_s18, %s445_s27  ;;  %p453_p4 = scmp.lt.u32.totalorder %s445_s27, %s716_s19 }
  0x5e   : > { %p447_p7 = pnand %p446_p12, %p781_p8 }
  0x5f   : > { %p452_p1 = por %p451_p0, %p450_p6 }
  0x60   : > { %p448_p9 = pneg %p447_p7 }
  0x61   : > { %p454_p2 = por %p453_p4, %p452_p1 }
  0x63   : > { %p455_p11 = pnand %p454_p2, %p448_p9 }
  0x65   : > { %458 = shalt.err (!%p455_p11)
}
  0x66   : > { %321 = dma.vmem_to_hbm [thread:$0]  (%p781_p8), %s711_s30, 32, %s716_s19, %s194_s16  }
  0x67 PF: > { %p338_p13 = scmp.ge.s32.totalorder %s517_s14, 2  ;;  %s220_s6 = sand.u32 1, %s497_s9  }
  0x68   : > { %p782_p3 = scmp.ne.s32.totalorder %s772_s20, 0  ;;  %s221_s17 = scalar_lea.sflag [#allocation4], %s220_s6 }
  0x6a   : > { %p332_p5 = pnand %p338_p13, %p782_p3 }
  0x6c   : > { %492 = dma.done.wait (!%p332_p5), %s221_s17, 32  }
  0x6d   : > { %494 = vsyncadd (!%p332_p5), %s221_s17, 4294967264  ;;  %s19_s14 = sadd.s32 1, %s517_s14   ;;  %s783_s9 = smov %s501_s10 }
  0x6e   : > { %p16_p10 = scmp.ge.s32.totalorder %s19_s14, 5   ;;  %s784_s10 = smov %s505_s11 }
  0x6f   : > { %s785_s11 = smov %s653_s26  ;;  %s786_s12 = smov %s513_s13 }
  0x70   : > { %s787_s13 = smov %s789_s22  ;;  %18 = sbr.rel (!%p16_p10) target bundleno = 7 (0x7), region = 78 }
  0x77   :  { %226 = vsyncpa [#allocation3], 1 }
  0x78   :  { %228 = vsyncpa [#allocation3 + $0x1], 1 }
  0x79   :  { %229 = vsyncpa [#allocation4], 1 }
  0x7a   :  { %231 = vsyncpa [#allocation4 + $0x1], 1 }
  0x7b   :  { %232 = vsyncpa [#allocation5], 1 }
  0x7c   :  { %234 = vsyncpa [#allocation5 + $0x1], 1 }

</bundles_post_ra>
